<compile_context>
chip_gen: v5e
topology: v5e:2x2
jax: 0.10.0
libtpu: 0.0.40
codegen_flags: <defaults>
</compile_context>

<pallas_src>
import functools

import jax
import jax.numpy as jnp
from jax.experimental import pallas as pl
from jax.experimental.pallas import tpu as pltpu

GATE_PAD = 128   # gate logits padded to a full lane tile inside the fused weight
TM_CAP = 1024    # diminishing returns past ~1k token rows per tile


# --------------------------------------------------------------------------- #
# Kernel body
# --------------------------------------------------------------------------- #
def _adapter_kernel(x_ref, wdg_ref, bdg_ref, wp_ref, bp_ref, wu_ref, bu_ref, o_ref):
    """Fused ReasoningAdapter for one block of tokens.

    x_ref  : (TM, H)         token block (f32 or bf16)
    wdg_ref: (H, A+GATE_PAD) fused [down-proj | gate(zero-padded)] weight
    bdg_ref: (1, A+GATE_PAD) fused bias
    wp_ref : (A, 3A)         three path weights packed along the output axis
    bp_ref : (1, 3A)         packed path biases
    wu_ref : (A, H)          up-projection weight
    bu_ref : (1, H)          up-projection bias
    o_ref  : (TM, H)         output block
    """
    A = wu_ref.shape[0]
    cdt = wp_ref.dtype          # compute (operand) dtype; accumulation is f32
    x = x_ref[...]

    # --- fused down-projection + gate logits (one MXU pass) ----------------
    hg = jnp.dot(x, wdg_ref[...], preferred_element_type=jnp.float32) + bdg_ref[...]
    # Cast hidden to the compute dtype immediately so the f32 (TM, A+128) block
    # dies right after the three 1-lane gate slices (shorter live range).
    hidden = hg[:, :A].astype(cdt)                   # (TM, A)
    l0 = hg[:, A:A + 1]                              # (TM, 1) gate logits
    l1 = hg[:, A + 1:A + 2]
    l2 = hg[:, A + 2:A + 3]

    # --- 3-way softmax with elementwise ops only (no cross-lane reduce) ----
    m = jnp.maximum(jnp.maximum(l0, l1), l2)
    e0 = jnp.exp(l0 - m)
    e1 = jnp.exp(l1 - m)
    e2 = jnp.exp(l2 - m)
    inv = pl.reciprocal(e0 + e1 + e2, approx=True)   # EUP slot, effectively free
    g0 = e0 * inv
    g1 = e1 * inv
    g2 = e2 * inv

    # --- all three reasoning paths in one (TM, 3A) matmul -------------------
    paths = jnp.dot(hidden, wp_ref[...],
                    preferred_element_type=jnp.float32) + bp_ref[...]
    reasoned = (g0 * paths[:, :A]
                + g1 * paths[:, A:2 * A]
                + g2 * paths[:, 2 * A:3 * A])        # (TM, A) f32

    # --- up projection + residual (residual add in f32) --------------------
    up = jnp.dot(reasoned.astype(cdt), wu_ref[...],
                 preferred_element_type=jnp.float32) + bu_ref[...]
    o_ref[...] = (x.astype(jnp.float32) + up).astype(o_ref.dtype)


# --------------------------------------------------------------------------- #
# Generation-aware tiling / VMEM budgeting
# --------------------------------------------------------------------------- #
def _round_up(n, m):
    return ((n + m - 1) // m) * m


def _vmem_capacity_bytes():
    try:
        info = pltpu.get_tpu_info()
        for name in ("vmem_capacity_bytes", "vmem_bytes", "vmem_size_bytes"):
            cap = getattr(info, name, None)
            if cap:
                return int(cap)
    except Exception:
        pass
    return 64 * 1024 * 1024   # conservative default: v7x per-TensorCore VMEM


def _derive_tiling(M, H, A, act_itemsize, w_bytes, gate_pad=GATE_PAD):
    """Token tile (rows) and vmem limit derived from an explicit VMEM budget."""
    cap = _vmem_capacity_bytes()
    # Leave ~20% headroom for Mosaic internal scratch: v5e/v6e land near
    # ~100 MiB, v7x near ~51 MiB.
    vmem_limit = max(32 << 20, min(int(cap * 0.8), 112 << 20))

    # bf16 vregs pack (16,128); 8-bit packs (32,128) -> align the token tile.
    align = {1: 32, 2: 16}.get(act_itemsize, 8)

    # Per-token-row VMEM bytes:
    #   x + out tiles, each double-buffered, in the activation dtype
    per_row = 2 * 2 * H * act_itemsize
    #   f32 body intermediates: hg (A+pad), paths (3A), reasoned (A), up (H),
    #   residual x cast (H)
    per_row += 4 * ((A + gate_pad) + 3 * A + A + H + H)
    #   hidden cast to the compute dtype
    per_row += act_itemsize * A

    slack = 8 << 20                                   # Mosaic internal scratch
    budget = max(vmem_limit - w_bytes - slack, per_row * align)
    tm = min(budget // per_row, TM_CAP)
    # Keep >= 2 grid steps whenever M allows so ("parallel",) can shard the
    # grid across both v7x TensorCores (harmless on 1-TC v5e/v6e).
    if M >= 2 * align:
        tm = min(tm, _round_up(pl.cdiv(M, 2), align))
    tm = min(tm, _round_up(M, align))
    tm = max(align, (tm // align) * align)
    return int(tm), int(vmem_limit)


# --------------------------------------------------------------------------- #
# pallas_call wrapper
# --------------------------------------------------------------------------- #
@functools.partial(
    jax.jit,
    static_argnames=("tm", "vmem_limit_bytes", "single_buffer_weights"),
    donate_argnums=(0,),   # x is donated -> input_output_aliases is truly in-place
)
def _adapter_call(x, packed, tm, vmem_limit_bytes, single_buffer_weights):
    B, S, H = x.shape
    A = packed["wu"].shape[0]
    M = B * S
    grid = pl.cdiv(M, tm)
    M_pad = grid * tm

    x_flat = x.reshape(M, H)
    if M_pad != M:
        # cdiv grid: zero-pad the last partial token tile (padding rows are
        # independent per-row work and are sliced off below).
        x_flat = jnp.pad(x_flat, ((0, M_pad - M), (0, 0)))

    nbytes = lambda a: a.size * a.dtype.itemsize
    w_bytes = sum(nbytes(packed[k]) for k in ("wdg", "bdg", "wp", "bp", "wu", "bu"))
    gpad = packed["wdg"].shape[1] - A
    cost = pl.CostEstimate(
        flops=int(2 * M_pad * H * (A + gpad) + 2 * M_pad * A * (3 * A)
                  + 2 * M_pad * A * H + 12 * M_pad * A),
        transcendentals=int(3 * M_pad),
        bytes_accessed=int(2 * nbytes(x_flat) + w_bytes),
    )

    def const(arr):
        shape = arr.shape
        idx = lambda i: (0,) * len(shape)
        if single_buffer_weights:
            # Grid-invariant operand: single buffer halves resident-weight VMEM.
            return pl.BlockSpec(shape, idx, pipeline_mode=pl.Buffered(1))
        return pl.BlockSpec(shape, idx)

    out_flat = pl.pallas_call(
        _adapter_kernel,
        out_shape=jax.ShapeDtypeStruct((M_pad, H), x.dtype),
        grid_spec=pltpu.PrefetchScalarGridSpec(
            num_scalar_prefetch=0,
            grid=(grid,),
            in_specs=[
                pl.BlockSpec((tm, H), lambda i: (i, 0)),   # x block
                const(packed["wdg"]),                      # fused down+gate weight
                const(packed["bdg"]),
                const(packed["wp"]),                       # packed path weights (A, 3A)
                const(packed["bp"]),
                const(packed["wu"]),
                const(packed["bu"]),
            ],
            out_specs=pl.BlockSpec((tm, H), lambda i: (i, 0)),
        ),
        compiler_params=pltpu.CompilerParams(
            dimension_semantics=("parallel",),
            vmem_limit_bytes=vmem_limit_bytes,
        ),
        cost_estimate=cost,
        # Safe: in/out BlockSpecs are identical and each x tile is fully read
        # before its output tile is written.
        input_output_aliases={0: 0},
    )(x_flat, packed["wdg"], packed["bdg"], packed["wp"], packed["bp"],
      packed["wu"], packed["bu"])

    if M_pad != M:
        out_flat = out_flat[:M]
    return out_flat.reshape(B, S, H)


def reasoning_adapter(x, packed):
    """x: (B, S, H).  packed: dict from pack_params().  NOTE: x is donated."""
    B, S, H = x.shape
    A = packed["wu"].shape[0]
    M = B * S
    nbytes = lambda a: a.size * a.dtype.itemsize
    w_bytes = sum(nbytes(packed[k]) for k in ("wdg", "bdg", "wp", "bp", "wu", "bu"))
    tm, vmem_limit = _derive_tiling(M, H, A, jnp.dtype(x.dtype).itemsize, w_bytes,
                                    gate_pad=packed["wdg"].shape[1] - A)
    try:
        return _adapter_call(x, packed, tm=tm, vmem_limit_bytes=vmem_limit,
                             single_buffer_weights=True)
    except Exception:
        # Fallback for jax builds where pl.Buffered(1) on a BlockSpec is not
        # supported: default double-buffered resident weights.
        return _adapter_call(x, packed, tm=tm, vmem_limit_bytes=vmem_limit,
                             single_buffer_weights=False)


# --------------------------------------------------------------------------- #
# Parameters, packing, reference
# --------------------------------------------------------------------------- #
def init_params(key, hidden_size, adapter_size):
    """Deterministic synthetic parameters, pre-transposed to (in, out)."""
    ks = jax.random.split(key, 8)
    scale = 0.05
    return {
        "wg": scale * jax.random.normal(ks[0], (hidden_size, 3), jnp.float32),
        "bg": scale * jax.random.normal(ks[1], (1, 3), jnp.float32),
        "wd": scale * jax.random.normal(ks[2], (hidden_size, adapter_size), jnp.float32),
        "bd": scale * jax.random.normal(ks[3], (1, adapter_size), jnp.float32),
        "wp": scale * jax.random.normal(ks[4], (3, adapter_size, adapter_size), jnp.float32),
        "bp": scale * jax.random.normal(ks[5], (3, 1, adapter_size), jnp.float32),
        "wu": scale * jax.random.normal(ks[6], (adapter_size, hidden_size), jnp.float32),
        "bu": scale * jax.random.normal(ks[7], (1, hidden_size), jnp.float32),
    }


def pack_params(params, dtype=jnp.float32, gate_pad=GATE_PAD):
    """One-time weight packing/casting for the kernel layout (bf16 recommended
    at production sizes, mandatory for the v7x VMEM budget)."""
    H, A = params["wd"].shape
    # Gate columns zero-padded to a full lane tile so the fused weight stays
    # lane-aligned.  Accepted MXU tax; at small A (<= ~256) split the gate out.
    wg_pad = jnp.zeros((H, gate_pad), params["wg"].dtype).at[:, :3].set(params["wg"])
    bg_pad = jnp.zeros((1, gate_pad), params["bg"].dtype).at[:, :3].set(params["bg"])
    return {
        "wdg": jnp.concatenate([params["wd"], wg_pad], axis=1).astype(dtype),   # (H, A+GP)
        "bdg": jnp.concatenate([params["bd"], bg_pad], axis=1).astype(dtype),   # (1, A+GP)
        "wp": jnp.concatenate([params["wp"][i] for i in range(3)], axis=1).astype(dtype),  # (A, 3A)
        "bp": jnp.concatenate([params["bp"][i] for i in range(3)], axis=1).astype(dtype),  # (1, 3A)
        "wu": params["wu"].astype(dtype),                                        # (A, H)
        "bu": params["bu"].astype(dtype),                                        # (1, H)
    }


def reference_forward(x, p):
    """Pure-JAX reference mirroring the PyTorch forward."""
    gates = jax.nn.softmax(x @ p["wg"] + p["bg"][0], axis=-1)
    hidden = x @ p["wd"] + p["bd"][0]
    reasoned = jnp.zeros_like(hidden)
    for i in range(3):
        reasoned = reasoned + gates[..., i:i + 1] * (hidden @ p["wp"][i] + p["bp"][i, 0])
    return x + reasoned @ p["wu"] + p["bu"][0]


if __name__ == "__main__":
    B, S, H, A = 2, 8, 32, 16   # batch, seq, hidden_size, adapter_size
    # TODO(synk): at production sizes H and A should be multiples of 128/256;
    # the wrapper does not pad the toy feature dims (full-dim blocks are used).

    key = jax.random.PRNGKey(0)
    kx, kp = jax.random.split(key)
    x = jax.random.normal(kx, (B, S, H), jnp.float32)
    params = init_params(kp, H, A)
    ref = reference_forward(x, params)

    # The kernel donates its input, so take the bf16 copy before the f32 call.
    x_bf16 = x.astype(jnp.bfloat16)

    # f32 path (tolerance loosened slightly for the approx-reciprocal softmax)
    packed_f32 = pack_params(params, jnp.float32)
    out_f32 = jax.block_until_ready(reasoning_adapter(x, packed_f32))
    assert out_f32.shape == (B, S, H)
    assert jnp.allclose(out_f32, ref, atol=1e-3, rtol=1e-3), "f32 mismatch vs reference"

    # bf16 path (preferred for real sizes): loose-tolerance check
    packed_bf16 = pack_params(params, jnp.bfloat16)
    out_bf16 = jax.block_until_ready(reasoning_adapter(x_bf16, packed_bf16))
    assert out_bf16.shape == (B, S, H)
    assert jnp.allclose(out_bf16.astype(jnp.float32), ref, atol=5e-2, rtol=5e-2), \
        "bf16 mismatch vs reference"

    print("KERNEL_OK")
</pallas_src>

<mosaic_0001>
module attributes {stable_mosaic.version = 11 : i64} {
  func.func @_adapter_kernel(%arg0: i32, %arg1: memref<8x32xf32, #tpu.memory_space<vmem>>, %arg2: memref<32x144xf32, #tpu.memory_space<vmem>>, %arg3: memref<1x144xf32, #tpu.memory_space<vmem>>, %arg4: memref<16x48xf32, #tpu.memory_space<vmem>>, %arg5: memref<1x48xf32, #tpu.memory_space<vmem>>, %arg6: memref<16x32xf32, #tpu.memory_space<vmem>>, %arg7: memref<1x32xf32, #tpu.memory_space<vmem>>, %arg8: memref<8x32xf32, #tpu.memory_space<vmem>>) attributes {dimension_semantics = [#tpu.dimension_semantics<parallel>], iteration_bounds = array<i64: 2>, scalar_prefetch = 0 : i64, scratch_operands = 0 : i64, tpu.core_type = #tpu.core_type<tc>, window_params = [{transform_indices = @transform_0, window_bounds = array<i64: 8, 32>}, {pipeline_mode = #tpu.pipeline_mode<synchronous>, transform_indices = @transform_1, window_bounds = array<i64: 32, 144>}, {pipeline_mode = #tpu.pipeline_mode<synchronous>, transform_indices = @transform_2, window_bounds = array<i64: 1, 144>}, {pipeline_mode = #tpu.pipeline_mode<synchronous>, transform_indices = @transform_3, window_bounds = array<i64: 16, 48>}, {pipeline_mode = #tpu.pipeline_mode<synchronous>, transform_indices = @transform_4, window_bounds = array<i64: 1, 48>}, {pipeline_mode = #tpu.pipeline_mode<synchronous>, transform_indices = @transform_5, window_bounds = array<i64: 16, 32>}, {pipeline_mode = #tpu.pipeline_mode<synchronous>, transform_indices = @transform_6, window_bounds = array<i64: 1, 32>}, {transform_indices = @transform_7, window_bounds = array<i64: 8, 32>}]} {
    %c0 = arith.constant 0 : index
    %c0_0 = arith.constant 0 : index
    %0 = vector.load %arg1[%c0, %c0_0] : memref<8x32xf32, #tpu.memory_space<vmem>>, vector<8x32xf32>
    %c0_1 = arith.constant 0 : index
    %c0_2 = arith.constant 0 : index
    %1 = vector.load %arg2[%c0_1, %c0_2] : memref<32x144xf32, #tpu.memory_space<vmem>>, vector<32x144xf32>
    %cst = arith.constant dense<0.000000e+00> : vector<8x144xf32>
    %2 = tpu.matmul %0, %1, %cst {dimension_numbers = #tpu.dot_dimension_numbers<[1], [0], [0], [1], [0, 0, 1, 1], [], []>} : vector<8x32xf32>, vector<32x144xf32>, vector<8x144xf32> -> vector<8x144xf32>
    %c0_3 = arith.constant 0 : index
    %c0_4 = arith.constant 0 : index
    %3 = vector.load %arg3[%c0_3, %c0_4] : memref<1x144xf32, #tpu.memory_space<vmem>>, vector<1x144xf32>
    %4 = vector.broadcast %3 : vector<1x144xf32> to vector<8x144xf32>
    %5 = arith.addf %2, %4 : vector<8x144xf32>
    %6 = vector.extract_strided_slice %5 {offsets = [0, 0], sizes = [8, 16], strides = [1, 1]} : vector<8x144xf32> to vector<8x16xf32>
    %7 = vector.extract_strided_slice %5 {offsets = [0, 16], sizes = [8, 1], strides = [1, 1]} : vector<8x144xf32> to vector<8x1xf32>
    %8 = vector.extract_strided_slice %5 {offsets = [0, 17], sizes = [8, 1], strides = [1, 1]} : vector<8x144xf32> to vector<8x1xf32>
    %9 = vector.extract_strided_slice %5 {offsets = [0, 18], sizes = [8, 1], strides = [1, 1]} : vector<8x144xf32> to vector<8x1xf32>
    %10 = arith.maximumf %7, %8 : vector<8x1xf32>
    %11 = arith.maximumf %10, %9 : vector<8x1xf32>
    %12 = arith.subf %7, %11 : vector<8x1xf32>
    %13 = math.exp %12 : vector<8x1xf32>
    %14 = arith.subf %8, %11 : vector<8x1xf32>
    %15 = math.exp %14 : vector<8x1xf32>
    %16 = arith.subf %9, %11 : vector<8x1xf32>
    %17 = math.exp %16 : vector<8x1xf32>
    %18 = arith.addf %13, %15 : vector<8x1xf32>
    %19 = arith.addf %18, %17 : vector<8x1xf32>
    %20 = tpu.reciprocal %19 {approx = true} : vector<8x1xf32> -> vector<8x1xf32>
    %21 = arith.mulf %13, %20 : vector<8x1xf32>
    %22 = arith.mulf %15, %20 : vector<8x1xf32>
    %23 = arith.mulf %17, %20 : vector<8x1xf32>
    %c0_5 = arith.constant 0 : index
    %c0_6 = arith.constant 0 : index
    %24 = vector.load %arg4[%c0_5, %c0_6] : memref<16x48xf32, #tpu.memory_space<vmem>>, vector<16x48xf32>
    %cst_7 = arith.constant dense<0.000000e+00> : vector<8x48xf32>
    %25 = tpu.matmul %6, %24, %cst_7 {dimension_numbers = #tpu.dot_dimension_numbers<[1], [0], [0], [1], [0, 0, 1, 1], [], []>} : vector<8x16xf32>, vector<16x48xf32>, vector<8x48xf32> -> vector<8x48xf32>
    %c0_8 = arith.constant 0 : index
    %c0_9 = arith.constant 0 : index
    %26 = vector.load %arg5[%c0_8, %c0_9] : memref<1x48xf32, #tpu.memory_space<vmem>>, vector<1x48xf32>
    %27 = vector.broadcast %26 : vector<1x48xf32> to vector<8x48xf32>
    %28 = arith.addf %25, %27 : vector<8x48xf32>
    %29 = vector.extract_strided_slice %28 {offsets = [0, 0], sizes = [8, 16], strides = [1, 1]} : vector<8x48xf32> to vector<8x16xf32>
    %30 = vector.broadcast %21 : vector<8x1xf32> to vector<8x16xf32>
    %31 = arith.mulf %30, %29 : vector<8x16xf32>
    %32 = vector.extract_strided_slice %28 {offsets = [0, 16], sizes = [8, 16], strides = [1, 1]} : vector<8x48xf32> to vector<8x16xf32>
    %33 = vector.broadcast %22 : vector<8x1xf32> to vector<8x16xf32>
    %34 = arith.mulf %33, %32 : vector<8x16xf32>
    %35 = arith.addf %31, %34 : vector<8x16xf32>
    %36 = vector.extract_strided_slice %28 {offsets = [0, 32], sizes = [8, 16], strides = [1, 1]} : vector<8x48xf32> to vector<8x16xf32>
    %37 = vector.broadcast %23 : vector<8x1xf32> to vector<8x16xf32>
    %38 = arith.mulf %37, %36 : vector<8x16xf32>
    %39 = arith.addf %35, %38 : vector<8x16xf32>
    %c0_10 = arith.constant 0 : index
    %c0_11 = arith.constant 0 : index
    %40 = vector.load %arg6[%c0_10, %c0_11] : memref<16x32xf32, #tpu.memory_space<vmem>>, vector<16x32xf32>
    %cst_12 = arith.constant dense<0.000000e+00> : vector<8x32xf32>
    %41 = tpu.matmul %39, %40, %cst_12 {dimension_numbers = #tpu.dot_dimension_numbers<[1], [0], [0], [1], [0, 0, 1, 1], [], []>} : vector<8x16xf32>, vector<16x32xf32>, vector<8x32xf32> -> vector<8x32xf32>
    %c0_13 = arith.constant 0 : index
    %c0_14 = arith.constant 0 : index
    %42 = vector.load %arg7[%c0_13, %c0_14] : memref<1x32xf32, #tpu.memory_space<vmem>>, vector<1x32xf32>
    %43 = vector.broadcast %42 : vector<1x32xf32> to vector<8x32xf32>
    %44 = arith.addf %41, %43 : vector<8x32xf32>
    %45 = arith.addf %0, %44 : vector<8x32xf32>
    %c0_15 = arith.constant 0 : index
    %c0_16 = arith.constant 0 : index
    %46 = vector.load %arg8[%c0_15, %c0_16] : memref<8x32xf32, #tpu.memory_space<vmem>>, vector<8x32xf32>
    tpu.vector_store %arg8[%c0_15, %c0_16], %45 {strides = array<i32>} : memref<8x32xf32, #tpu.memory_space<vmem>>, vector<8x32xf32>,
    return
  }
  func.func @transform_0(%arg0: i32) -> (i32, i32) {
    %c0_i32 = arith.constant 0 : i32
    %c0_i32_0 = arith.constant 0 : i32
    return %arg0, %c0_i32 : i32, i32
  }
  func.func @transform_1(%arg0: i32) -> (i32, i32) {
    %c0_i32 = arith.constant 0 : i32
    %c0_i32_0 = arith.constant 0 : i32
    %c0_i32_1 = arith.constant 0 : i32
    return %c0_i32, %c0_i32_0 : i32, i32
  }
  func.func @transform_2(%arg0: i32) -> (i32, i32) {
    %c0_i32 = arith.constant 0 : i32
    %c0_i32_0 = arith.constant 0 : i32
    %c0_i32_1 = arith.constant 0 : i32
    return %c0_i32, %c0_i32_0 : i32, i32
  }
  func.func @transform_3(%arg0: i32) -> (i32, i32) {
    %c0_i32 = arith.constant 0 : i32
    %c0_i32_0 = arith.constant 0 : i32
    %c0_i32_1 = arith.constant 0 : i32
    return %c0_i32, %c0_i32_0 : i32, i32
  }
  func.func @transform_4(%arg0: i32) -> (i32, i32) {
    %c0_i32 = arith.constant 0 : i32
    %c0_i32_0 = arith.constant 0 : i32
    %c0_i32_1 = arith.constant 0 : i32
    return %c0_i32, %c0_i32_0 : i32, i32
  }
  func.func @transform_5(%arg0: i32) -> (i32, i32) {
    %c0_i32 = arith.constant 0 : i32
    %c0_i32_0 = arith.constant 0 : i32
    %c0_i32_1 = arith.constant 0 : i32
    return %c0_i32, %c0_i32_0 : i32, i32
  }
  func.func @transform_6(%arg0: i32) -> (i32, i32) {
    %c0_i32 = arith.constant 0 : i32
    %c0_i32_0 = arith.constant 0 : i32
    %c0_i32_1 = arith.constant 0 : i32
    return %c0_i32, %c0_i32_0 : i32, i32
  }
  func.func @transform_7(%arg0: i32) -> (i32, i32) {
    %c0_i32 = arith.constant 0 : i32
    %c0_i32_0 = arith.constant 0 : i32
    return %arg0, %c0_i32 : i32, i32
  }
}

module attributes {stable_mosaic.version = 11 : i64} {
  func.func @_adapter_kernel(%arg0: i32, %arg1: memref<8x32xf32, #tpu.memory_space<vmem>>, %arg2: memref<32x144xf32, #tpu.memory_space<vmem>>, %arg3: memref<1x144xf32, #tpu.memory_space<vmem>>, %arg4: memref<16x48xf32, #tpu.memory_space<vmem>>, %arg5: memref<1x48xf32, #tpu.memory_space<vmem>>, %arg6: memref<16x32xf32, #tpu.memory_space<vmem>>, %arg7: memref<1x32xf32, #tpu.memory_space<vmem>>, %arg8: memref<8x32xf32, #tpu.memory_space<vmem>>) attributes {dimension_semantics = [#tpu.dimension_semantics<parallel>], iteration_bounds = array<i64: 2>, scalar_prefetch = 0 : i64, scratch_operands = 0 : i64, tpu.core_type = #tpu.core_type<tc>, window_params = [{transform_indices = @transform_0, window_bounds = array<i64: 8, 32>}, {pipeline_mode = #tpu.pipeline_mode<synchronous>, transform_indices = @transform_1, window_bounds = array<i64: 32, 144>}, {pipeline_mode = #tpu.pipeline_mode<synchronous>, transform_indices = @transform_2, window_bounds = array<i64: 1, 144>}, {pipeline_mode = #tpu.pipeline_mode<synchronous>, transform_indices = @transform_3, window_bounds = array<i64: 16, 48>}, {pipeline_mode = #tpu.pipeline_mode<synchronous>, transform_indices = @transform_4, window_bounds = array<i64: 1, 48>}, {pipeline_mode = #tpu.pipeline_mode<synchronous>, transform_indices = @transform_5, window_bounds = array<i64: 16, 32>}, {pipeline_mode = #tpu.pipeline_mode<synchronous>, transform_indices = @transform_6, window_bounds = array<i64: 1, 32>}, {transform_indices = @transform_7, window_bounds = array<i64: 8, 32>}]} {
    %c0 = arith.constant 0 : index
    %c0_0 = arith.constant 0 : index
    %0 = vector.load %arg1[%c0, %c0_0] : memref<8x32xf32, #tpu.memory_space<vmem>>, vector<8x32xf32>
    %c0_1 = arith.constant 0 : index
    %c0_2 = arith.constant 0 : index
    %1 = vector.load %arg2[%c0_1, %c0_2] : memref<32x144xf32, #tpu.memory_space<vmem>>, vector<32x144xf32>
    %cst = arith.constant dense<0.000000e+00> : vector<8x144xf32>
    %2 = tpu.matmul %0, %1, %cst {dimension_numbers = #tpu.dot_dimension_numbers<[1], [0], [0], [1], [0, 0, 1, 1], [], []>} : vector<8x32xf32>, vector<32x144xf32>, vector<8x144xf32> -> vector<8x144xf32>
    %c0_3 = arith.constant 0 : index
    %c0_4 = arith.constant 0 : index
    %3 = vector.load %arg3[%c0_3, %c0_4] : memref<1x144xf32, #tpu.memory_space<vmem>>, vector<1x144xf32>
    %4 = vector.broadcast %3 : vector<1x144xf32> to vector<8x144xf32>
    %5 = arith.addf %2, %4 : vector<8x144xf32>
    %6 = vector.extract_strided_slice %5 {offsets = [0, 0], sizes = [8, 16], strides = [1, 1]} : vector<8x144xf32> to vector<8x16xf32>
    %7 = vector.extract_strided_slice %5 {offsets = [0, 16], sizes = [8, 1], strides = [1, 1]} : vector<8x144xf32> to vector<8x1xf32>
    %8 = vector.extract_strided_slice %5 {offsets = [0, 17], sizes = [8, 1], strides = [1, 1]} : vector<8x144xf32> to vector<8x1xf32>
    %9 = vector.extract_strided_slice %5 {offsets = [0, 18], sizes = [8, 1], strides = [1, 1]} : vector<8x144xf32> to vector<8x1xf32>
    %10 = arith.maximumf %7, %8 : vector<8x1xf32>
    %11 = arith.maximumf %10, %9 : vector<8x1xf32>
    %12 = arith.subf %7, %11 : vector<8x1xf32>
    %13 = math.exp %12 : vector<8x1xf32>
    %14 = arith.subf %8, %11 : vector<8x1xf32>
    %15 = math.exp %14 : vector<8x1xf32>
    %16 = arith.subf %9, %11 : vector<8x1xf32>
    %17 = math.exp %16 : vector<8x1xf32>
    %18 = arith.addf %13, %15 : vector<8x1xf32>
    %19 = arith.addf %18, %17 : vector<8x1xf32>
    %20 = tpu.reciprocal %19 {approx = true} : vector<8x1xf32> -> vector<8x1xf32>
    %21 = arith.mulf %13, %20 : vector<8x1xf32>
    %22 = arith.mulf %15, %20 : vector<8x1xf32>
    %23 = arith.mulf %17, %20 : vector<8x1xf32>
    %c0_5 = arith.constant 0 : index
    %c0_6 = arith.constant 0 : index
    %24 = vector.load %arg4[%c0_5, %c0_6] : memref<16x48xf32, #tpu.memory_space<vmem>>, vector<16x48xf32>
    %cst_7 = arith.constant dense<0.000000e+00> : vector<8x48xf32>
    %25 = tpu.matmul %6, %24, %cst_7 {dimension_numbers = #tpu.dot_dimension_numbers<[1], [0], [0], [1], [0, 0, 1, 1], [], []>} : vector<8x16xf32>, vector<16x48xf32>, vector<8x48xf32> -> vector<8x48xf32>
    %c0_8 = arith.constant 0 : index
    %c0_9 = arith.constant 0 : index
    %26 = vector.load %arg5[%c0_8, %c0_9] : memref<1x48xf32, #tpu.memory_space<vmem>>, vector<1x48xf32>
    %27 = vector.broadcast %26 : vector<1x48xf32> to vector<8x48xf32>
    %28 = arith.addf %25, %27 : vector<8x48xf32>
    %29 = vector.extract_strided_slice %28 {offsets = [0, 0], sizes = [8, 16], strides = [1, 1]} : vector<8x48xf32> to vector<8x16xf32>
    %30 = vector.broadcast %21 : vector<8x1xf32> to vector<8x16xf32>
    %31 = arith.mulf %30, %29 : vector<8x16xf32>
    %32 = vector.extract_strided_slice %28 {offsets = [0, 16], sizes = [8, 16], strides = [1, 1]} : vector<8x48xf32> to vector<8x16xf32>
    %33 = vector.broadcast %22 : vector<8x1xf32> to vector<8x16xf32>
    %34 = arith.mulf %33, %32 : vector<8x16xf32>
    %35 = arith.addf %31, %34 : vector<8x16xf32>
    %36 = vector.extract_strided_slice %28 {offsets = [0, 32], sizes = [8, 16], strides = [1, 1]} : vector<8x48xf32> to vector<8x16xf32>
    %37 = vector.broadcast %23 : vector<8x1xf32> to vector<8x16xf32>
    %38 = arith.mulf %37, %36 : vector<8x16xf32>
    %39 = arith.addf %35, %38 : vector<8x16xf32>
    %c0_10 = arith.constant 0 : index
    %c0_11 = arith.constant 0 : index
    %40 = vector.load %arg6[%c0_10, %c0_11] : memref<16x32xf32, #tpu.memory_space<vmem>>, vector<16x32xf32>
    %cst_12 = arith.constant dense<0.000000e+00> : vector<8x32xf32>
    %41 = tpu.matmul %39, %40, %cst_12 {dimension_numbers = #tpu.dot_dimension_numbers<[1], [0], [0], [1], [0, 0, 1, 1], [], []>} : vector<8x16xf32>, vector<16x32xf32>, vector<8x32xf32> -> vector<8x32xf32>
    %c0_13 = arith.constant 0 : index
    %c0_14 = arith.constant 0 : index
    %42 = vector.load %arg7[%c0_13, %c0_14] : memref<1x32xf32, #tpu.memory_space<vmem>>, vector<1x32xf32>
    %43 = vector.broadcast %42 : vector<1x32xf32> to vector<8x32xf32>
    %44 = arith.addf %41, %43 : vector<8x32xf32>
    %45 = arith.addf %0, %44 : vector<8x32xf32>
    %c0_15 = arith.constant 0 : index
    %c0_16 = arith.constant 0 : index
    %46 = vector.load %arg8[%c0_15, %c0_16] : memref<8x32xf32, #tpu.memory_space<vmem>>, vector<8x32xf32>
    tpu.vector_store %arg8[%c0_15, %c0_16], %45 {strides = array<i32>} : memref<8x32xf32, #tpu.memory_space<vmem>>, vector<8x32xf32>,
    return
  }
  func.func @transform_0(%arg0: i32) -> (i32, i32) {
    %c0_i32 = arith.constant 0 : i32
    %c0_i32_0 = arith.constant 0 : i32
    return %arg0, %c0_i32 : i32, i32
  }
  func.func @transform_1(%arg0: i32) -> (i32, i32) {
    %c0_i32 = arith.constant 0 : i32
    %c0_i32_0 = arith.constant 0 : i32
    %c0_i32_1 = arith.constant 0 : i32
    return %c0_i32, %c0_i32_0 : i32, i32
  }
  func.func @transform_2(%arg0: i32) -> (i32, i32) {
    %c0_i32 = arith.constant 0 : i32
    %c0_i32_0 = arith.constant 0 : i32
    %c0_i32_1 = arith.constant 0 : i32
    return %c0_i32, %c0_i32_0 : i32, i32
  }
  func.func @transform_3(%arg0: i32) -> (i32, i32) {
    %c0_i32 = arith.constant 0 : i32
    %c0_i32_0 = arith.constant 0 : i32
    %c0_i32_1 = arith.constant 0 : i32
    return %c0_i32, %c0_i32_0 : i32, i32
  }
  func.func @transform_4(%arg0: i32) -> (i32, i32) {
    %c0_i32 = arith.constant 0 : i32
    %c0_i32_0 = arith.constant 0 : i32
    %c0_i32_1 = arith.constant 0 : i32
    return %c0_i32, %c0_i32_0 : i32, i32
  }
  func.func @transform_5(%arg0: i32) -> (i32, i32) {
    %c0_i32 = arith.constant 0 : i32
    %c0_i32_0 = arith.constant 0 : i32
    %c0_i32_1 = arith.constant 0 : i32
    return %c0_i32, %c0_i32_0 : i32, i32
  }
  func.func @transform_6(%arg0: i32) -> (i32, i32) {
    %c0_i32 = arith.constant 0 : i32
    %c0_i32_0 = arith.constant 0 : i32
    %c0_i32_1 = arith.constant 0 : i32
    return %c0_i32, %c0_i32_0 : i32, i32
  }
  func.func @transform_7(%arg0: i32) -> (i32, i32) {
    %c0_i32 = arith.constant 0 : i32
    %c0_i32_0 = arith.constant 0 : i32
    return %arg0, %c0_i32 : i32, i32
  }
}

</mosaic_0001>

<bundles_post_ra>
// kernel: _adapter_call.1
= control target key start
LH: loop header
LB: loop body
LE: loop exit
PB: predicated region body
PF: predicated region fallthrough
CT: control target
= control target key end

     0   :  { %s1255_s0 = inlined_call_operand.hbm [shape: f32[16,32], index: 0, kind: input, shape index: {}, may-alias: {0,7}]   ;;  %s1256_s1 = inlined_call_operand.hbm [shape: f32[32,144], index: 1, kind: input, shape index: {}]   ;;  %s1257_s2 = inlined_call_operand.hbm [shape: f32[1,144], index: 2, kind: input, shape index: {}]   ;;  %s1258_s3 = inlined_call_operand.hbm [shape: f32[16,48], index: 3, kind: input, shape index: {}]   ;;  %s1259_s4 = inlined_call_operand.vmem [shape: f32[1,48], index: 4, kind: input, shape index: {}]   ;;  %s1260_s5 = inlined_call_operand.hbm [shape: f32[16,32], index: 5, kind: input, shape index: {}]   ;;  %s1261_s6 = inlined_call_operand.vmem [shape: f32[1,32], index: 6, kind: input, shape index: {}]   ;;  %s1262_s7 = inlined_call_operand.hbm [shape: f32[16,32], index: 7, kind: output, shape index: {}, may-alias: {0,7}]  }
   0x1   :  { %1263 = sst [smem:[#allocation16_spill]] %s1256_s1 }
   0x2   :  { %1264 = sst [smem:[#allocation17_spill]] %s1257_s2 }
   0x3   :  { %12 = vsyncpa [#allocation3], 0 }
   0x4   :  { %14 = vsyncpa [#allocation3 + $0x1], 0 }
   0x5   :  { %15 = vsyncpa [#allocation6], 0 }
   0x6   :  { %16 = vsyncpa [#allocation9], 0 }
   0x7   :  { %17 = vsyncpa [#allocation4], 0 }
   0x8   :  { %19 = vsyncpa [#allocation4 + $0x1], 0  ;;  %s1070_s24 = smov 0   ;;  %s1072_s25 = smov 0  }
   0x9   :  { %s1074_s26 = smov 0   ;;  %s1076_s27 = smov 0  }
   0xa LB: > { %s1265_s1 = sld [smem:[#allocation16_spill]]  ;;  %s1094_s8 = sadd.s32 4294967295, %s1011_s27   ;;  %s1011_s27 = sphi %s1076_s27, %s1278_s27   ;;  %s1007_s26 = sphi %s1074_s26, %s1277_s26   ;;  %s1003_s25 = sphi %s1072_s25, %s1276_s25   ;;  %s999_s24 = sphi %s1070_s24, %s1275_s24  }
   0xb   : > { %p652_p0 = scmp.ge.s32.totalorder %s1011_s27, 1  ;;  %p46_p1 = scmp.eq.s32.totalorder %s1094_s8, 0 }
   0xc   : > { %p208_p2 = scmp.lt.s32.totalorder %s1011_s27, 3  ;;  %s1013_s10 = smov [#allocation5]  }
   0xd   : > { %s221_s11 = sshll.u32 %s1013_s10, 4  ;;  %s245_s14 = sshll.u32 %s1258_s3, 4  ;;  %s222_s11 = int_to_ptr.vmem [resolvable:$true] %s221_s11  ;;  %s246_s14 = int_to_ptr.hbm [resolvable:$true] %s245_s14 }
   0xe   : > { %p1099_p3 = pnand %p652_p0, %p208_p2  ;;  %s1014_s16 = smov [#allocation8]  }
   0xf   : > { %s247_s17 = sshll.u32 %s1014_s16, 4  ;;  %s1015_s18 = smov 256   ;;  %s248_s17 = int_to_ptr.vmem [resolvable:$true] %s247_s17 }
  0x10   : > { %s219_s30 = sshll.u32 %s1265_s1, 4  ;;  %p694_p4 = pneg %p1099_p3  ;;  %s220_s30 = int_to_ptr.hbm [resolvable:$true] %s219_s30 }
  0x11   : > { %s1016_s19 = smov 16   ;;  %s1017_s20 = smov 128  }
  0x12   : > { %p1111_p6 = pnand %p694_p4, %p46_p1  ;;  %s1018_s21 = smov 8  }
  0x13   : > { %s1268_s2 = sld [smem:[#allocation17_spill]]  ;;  %s1019_s29 = smov [#allocation7]  }
  0x14   : > { %697 = dma.hbm_to_vmem [thread:$0]  (!%p1111_p6), %s220_s30, 1024, %s222_s11, [#allocation6], %s1015_s18, %s1015_s18, %s1016_s19  }
  0x15   : > { %703 = dma.hbm_to_vmem [thread:$0]  (!%p1111_p6), %s246_s14, 256, %s248_s17, [#allocation9], %s1017_s20, %s1017_s20, %s1018_s21  }
  0x16   : > { %s236_s30 = sshll.u32 %s1019_s29, 4  ;;  %s262_s12 = sshll.u32 %s1260_s5, 4  ;;  %s237_s30 = int_to_ptr.vmem [resolvable:$true] %s236_s30  ;;  %s263_s12 = int_to_ptr.hbm [resolvable:$true] %s262_s12 }
  0x17   : > { %s1020_s13 = smov [#allocation10]   ;;  %s651_s16 = sadd.s32 4294967294, %s1011_s27  }
  0x18   : > { %s264_s14 = sshll.u32 %s1020_s13, 4  ;;  %s1131_s17 = sadd.s32 1, %s1011_s27   ;;  %s265_s14 = int_to_ptr.vmem [resolvable:$true] %s264_s14 }
  0x19   : > { %s234_s28 = sshll.u32 %s1268_s2, 4  ;;  %s29_s18 = ssub.s32 %s1011_s27, %s1131_s17  ;;  %s235_s28 = int_to_ptr.hbm [resolvable:$true] %s234_s28 }
  0x1a   : > { %700 = dma.hbm_to_vmem [thread:$0]  (!%p1111_p6), %s235_s28, 32, %s237_s30, [#allocation6]  }
  0x1b   : > { %706 = dma.hbm_to_vmem [thread:$0]  (!%p1111_p6), %s263_s12, 256, %s265_s14, [#allocation9], %s1017_s20, %s1017_s20, %s1018_s21  }
  0x1c   : > { %s32_s19 = sadd.s32 1, %s1007_s26  ;;  %p30_p7 = scmp.eq.s32.totalorder %s29_s18, 0 }
  0x1d   : > { %p39_p8 = scmp.ne.s32.totalorder %s1007_s26, %s1003_s25  ;;  %p40_p9 = scmp.eq.s32.totalorder %s1011_s27, 0 }
  0x1e   : > { %p45_p10 = scmp.ne.s32.totalorder %s1003_s25, %s999_s24  ;;  %p195_p13 = scmp.eq.s32.totalorder %s1094_s8, 1 }
  0x1f   : > { %s1142_s22 = scalar_select %p30_p7, %s1007_s26, %s32_s19  }
  0x20   : > { %p1144_p11 = por %p40_p9, %p39_p8  ;;  %p1150_p12 = por %p46_p1, %p45_p10 }
  0x21   : > { %p201_p0 = scmp.eq.s32.totalorder %s651_s16, 1  ;;  %p719_p2 = scmp.lt.s32.totalorder %s1011_s27, 2 }
  0x22   : > { %s281_s20 = sand.u32 1, %s1007_s26   ;;  %p1157_p4 = por %p195_p13, %p39_p8 }
  0x23   : > { %p1161_p6 = por %p201_p0, %p45_p10  ;;  %s658_s29 = sshll.u32 %s281_s20, 3 }
  0x24   : > { %s659_s30 = sshll.u32 %s1011_s27, 3  ;;  %s285_s13 = scalar_lea.vmem [#allocation2], %s658_s29 }
  0x25   : > { %s289_s12 = scalar_lea.hbm %s1255_s0, %s659_s30  ;;  %s293_s14 = sshll.u32 %s285_s13, 4  ;;  %s294_s14 = int_to_ptr.vmem [resolvable:$true] %s293_s14 }
  0x26   : > { %s291_s18 = sshll.u32 %s289_s12, 4  ;;  %p1171_p7 = pnand %p719_p2, %p1144_p11  ;;  %s292_s18 = int_to_ptr.hbm [resolvable:$true] %s291_s18 }
  0x27   : > { %s282_s19 = scalar_lea.sflag [#allocation3], %s281_s20  ;;  %s907_s1 = sshra.s32 %s292_s18, 4  ;;  %s908_s1 = int_to_ptr.hbm [resolvable:$true] %s907_s1 }
  0x28   : > { %s909_s2 = scalar_lea.hbm %s908_s1, 8  ;;  %p911_p9 = pneg %p1171_p7 }
  0x29   : > { %p910_p8 = scmp.ne.s32.totalorder %s908_s1, %s909_s2  ;;  %s914_s10 = scalar_lea.hbm %s1255_s0, 16 }
  0x2a   : > { %p915_p11 = scmp.lt.s32.totalorder %s908_s1, %s1255_s0  ;;  %p916_p0 = scmp.lt.s32.totalorder %s914_s10, %s909_s2 }
  0x2b   : > { %p912_p10 = pnand %p911_p9, %p910_p8 }
  0x2c   : > { %p917_p2 = por %p916_p0, %p915_p11 }
  0x2d   : > { %p913_p13 = pneg %p912_p10 }
  0x2f   : > { %p918_p5 = pnand %p917_p2, %p913_p13 }
  0x31   : > { %921 = shalt.err (!%p918_p5)
}
  0x32   : > { %710 = dma.hbm_to_vmem [thread:$0]  (!%p1171_p7), %s292_s18, 128, %s294_s14, %s282_s19  }
  0x33   : > { %302 = sbr.rel (%p1099_p3) target bundleno = 1046 (0x416), region = 48  ;;  %s1188_s20 = sand.u32 (!%p1099_p3), 1, %s1003_s25  }
  0x34   : > { %s661_s12 = sshll.u32 (!%p1099_p3), %s1188_s20, 3  ;;  %s305_s13 = scalar_lea.sflag (!%p1099_p3), [#allocation3], %s1188_s20 }
  0x35   : > { %s308_s1 = scalar_lea.vmem (!%p1099_p3), [#allocation2], %s661_s12 }
  0x38   : > { %982 = dma.done.wait (%p1150_p12), %s305_s13, 128  }
  0x39   : > { %984 = vsyncadd (%p1150_p12), %s305_s13, 4294967168 }
  0x3a   : > { %986 = dma.done.wait (%p46_p1), [#allocation6], 1056  }
  0x3b   : > { %988 = vsyncadd (%p46_p1), [#allocation6], 4294966240 }
  0x3c   : > { %990 = dma.done.wait (%p46_p1), [#allocation9], 512  }
  0x3d   : > { %992 = vsyncadd (%p46_p1), [#allocation9], 4294966784  ;;  %v364_v0 = vld [vmem:[#allocation5 + $0x30] sm:$0xff]  ;;  %v363_v1 = vld [vmem:[#allocation5 + $0x20] sm:$0xff]  ;;  %vm369_vm0 = vcmask 261120   ;;  %vm445_vm1 = vcmask 130048  }
  0x3e   : > { %385 = vmatpush.msra.mxu0 %v364_v0  ;;  %v362_v2 = vld [vmem:[#allocation5 + $0x10] sm:$0xff]  ;;  %v361_v3 = vld [vmem:[#allocation5] sm:$0xff]  ;;  %s1021_s2 = smov 127   ;;  %s1022_s9 = smov 126   ;;  %v1025_v23 = vmov 16   ;;  %v1026_v33 = vmov 18  }
  0x3f   : > { %v1206_v4 = vld [vmem:[%s308_s1] sm:$0xff]  ;;  %v439_v6 = vld [vmem:[#allocation8] sm:$0xff]  ;;  %v365_v7 = vld [vmem:[#allocation7] sm:$0x3]  ;;  %s1023_s15 = smov 1   ;;  %s1024_s14 = smov 2   ;;  %776 = vset.pattern.permute.xlu1 %v1025_v23  ;;  %775 = vset.pattern.permute.xlu0 %v1026_v33 }
  0x40   : > { %386 = vmatpush.msra.mxu0 %v363_v1  ;;  %v440_v5 = vld [vmem:[#allocation8 + $0x8] sm:$0xff]  ;;  %v367_v8 = vperm.slane %v365_v7, 0  ;;  %v1027_v34 = vmov 17   ;;  %s1028_s19 = smov 112   ;;  %s1029_s29 = smov 96   ;;  %v497_v46 = vld [vmem:[#allocation10 + $0x8] sm:$0xff] }
  0x41   : > { %462 = vmatpush.msra.mxu1 %v440_v5  ;;  %774 = vset.pattern.permute.xlu2 %v1027_v34  ;;  %v777_v39 = vld [vmem:[%s1259_s4] ss:$0 sm:$0xff]  ;;  %v496_v47 = vld [vmem:[#allocation10] sm:$0xff]  ;;  %s671_s30 = sshll.u32 %s1094_s8, 3  ;;  %s528_s8 = scalar_lea.sflag [#allocation4], %s1188_s20 }
  0x42   : > { %387 = vmatpush.msra.mxu0 %v362_v2  ;;  %519 = vmatpush.msra.mxu2 %v497_v46  ;;  %v778_v54 = vld [vmem:[%s1261_s6] ss:$0 sm:$0xff]  ;;  %s538_s1 = scalar_lea.hbm %s1262_s7, %s671_s30 }
  0x43   : > { %463 = vmatpush.msra.mxu1 %v439_v6 }
  0x44   : > { %388 = vmatpush.msra.mxu0 %v361_v3  ;;  %520 = vmatpush.msra.mxu2 %v496_v47 }
  0x45   : > { %667 = vmatmul.msk.f32.vlgmr.msra.gmra.mxu0 %vm369_vm0, %v1206_v4 }
  0xc2   : > { %v390_v9 = vpop.f32.mrf.mxu0 }
  0xc3   : > { %v391_v10 = vadd.f32 %v390_v9, %v367_v8 }
  0xc5   : > { %394 = vrot.lane.b32.xlu0 %v391_v10, %s1021_s2  ;;  %668 = vmatmul.msk.f32.vlgmr.msra.gmra.mxu1 %vm445_vm1, %v391_v10 }
  0xcd   : > { %398 = vrot.lane.b32.xlu0 %v391_v10, %s1022_s9 }
 0x137   : > { %v395_v11 = vpop.permute.xlu0 %394 }
 0x138   : > { %v397_v12 = vmax.f32 %v391_v10, %v395_v11 }
 0x13f   : > { %v399_v13 = vpop.permute.xlu0 %398 }
 0x140   : > { %v401_v14 = vmax.f32 %v397_v12, %v399_v13 }
 0x142   : > { %406 = vrot.lane.b32.xlu1 %v401_v14, %s1023_s15  ;;  %v402_v24 = vsub.f32 %v391_v10, %v401_v14  ;;  %v465_v40 = vpop.f32.mrf.mxu1 }
 0x143   : > { %v466_v41 = vadd.f32 %v777_v39, %v465_v40 }
 0x144   : > { %v403_v25 = vmul.f32 1.442695, %v402_v24 }
 0x14a   : > { %412 = vrot.lane.b32.xlu1 %v401_v14, %s1024_s14 }
 0x1b4   : > { %v407_v15 = vpop.permute.xlu1 %406 }
 0x1b5   : > { %v409_v16 = vsub.f32 %v391_v10, %v407_v15 }
 0x1b7   : > { %v410_v17 = vmul.f32 1.442695, %v409_v16 }
 0x1b9   : > { %779 = vpow2.f32 %v410_v17 }
 0x1bc   : > { %v413_v18 = vpop.permute.xlu1 %412 }
 0x1bd   : > { %v415_v19 = vsub.f32 %v391_v10, %v413_v18 }
 0x1bf   : > { %v780_v20 = vpop.eup %779  ;;  %v416_v21 = vmul.f32 1.442695, %v415_v19 }
 0x1c0   : > { %419 = vrot.lane.b32.xlu2 %v780_v20, %s1021_s2  ;;  %s359_s2 = scalar_lea.vmem [#allocation11], %s661_s12  ;;  %s957_s12 = scalar_lea.hbm %s1262_s7, 16 }
 0x1c1   : > { %781 = vpow2.f32 %v416_v21 }
 0x1c2   : > { %783 = vpow2.f32 %v403_v25 }
 0x1c7   : > { %v782_v22 = vpop.eup %781 }
 0x1c8   : > { %424 = vrot.lane.b32.xlu2 %v782_v22, %s1022_s9  ;;  %v784_v27 = vpop.eup %783  ;;  %s540_s9 = sshll.u32 %s359_s2, 4  ;;  %s541_s9 = int_to_ptr.vmem [resolvable:$true] %s540_s9 }
 0x21a   : > { %v420_v26 = vpop.permute.xlu2 %419 }
 0x21b   : > { %v422_v28 = vadd.f32 %v784_v27, %v420_v26 }
 0x222   : > { %v425_v29 = vpop.permute.xlu2 %424 }
 0x223   : > { %v427_v30 = vadd.f32 %v425_v29, %v422_v28 }
 0x225   : > { %785 = vrcp.f32 %v427_v30 }
 0x22b   : > { %v786_v31 = vpop.eup %785 }
 0x22c   : > { %435 = vrot.lane.b32.xlu1 %v786_v31, %s1024_s14  ;;  %431 = vrot.lane.b32.xlu0 %v786_v31, %s1023_s15  ;;  %v429_v32 = vmul.f32 %v786_v31, %v784_v27  ;;  %s542_s15 = sshll.u32 %s538_s1, 4  ;;  %s543_s15 = int_to_ptr.hbm [resolvable:$true] %s542_s15 }
 0x22d   : > { %s951_s14 = sshra.s32 %s543_s15, 4  ;;  %s952_s14 = int_to_ptr.hbm [resolvable:$true] %s951_s14 }
 0x22e   : > { %s953_s18 = scalar_lea.hbm %s952_s14, 8  ;;  %p958_p12 = scmp.lt.s32.totalorder %s952_s14, %s1262_s7 }
 0x22f   : > { %p954_p1 = scmp.ne.s32.totalorder %s952_s14, %s953_s18  ;;  %p959_p7 = scmp.lt.s32.totalorder %s957_s12, %s953_s18 }
 0x231   : > { %p955_p3 = pnand %p954_p1, %p1157_p4  ;;  %p960_p8 = por %p959_p7, %p958_p12 }
 0x233   : > { %p956_p5 = pneg %p955_p3 }
 0x234   : > { %470 = vperm.xlu1 %776, %v429_v32  }
 0x235   : > { %p961_p9 = pnand %p960_p8, %p956_p5 }
 0x29e   : > { %v436_v35 = vpop.permute.xlu1 %435  ;;  %v432_v36 = vpop.permute.xlu0 %431 }
 0x29f   : > { %v438_v37 = vmul.f32 %v782_v22, %v436_v35  ;;  %v434_v38 = vmul.f32 %v780_v20, %v432_v36 }
 0x2a1   : > { %487 = vperm.xlu0 %775, %v438_v37   ;;  %476 = vperm.xlu2 %774, %v434_v38  }
 0x2a6   : > { %v471_v48 = vpop.permute.xlu1 %470 }
 0x2a7   : > { %v473_v50 = vmul.f32 %v471_v48, %v466_v41 }
 0x2fb   : > { %v477_v42 = vpop.permute.xlu2 %476 }
 0x2fc   : > { %v479_v43 = vmul.f32 %v477_v42, %v466_v41 }
 0x2fe   : > { %481 = vrot.lane.b32.xlu2 %v479_v43, %s1028_s19 }
 0x313   : > { %v488_v44 = vpop.permute.xlu0 %487 }
 0x314   : > { %v490_v45 = vmul.f32 %v488_v44, %v466_v41 }
 0x316   : > { %492 = vrot.lane.b32.xlu1 %v490_v45, %s1029_s29 }
 0x358   : > { %v482_v49 = vpop.permute.xlu2 %481 }
 0x359   : > { %v484_v51 = vadd.f32 %v482_v49, %v473_v50 }
 0x388   : > { %v493_v52 = vpop.permute.xlu1 %492 }
 0x389   : > { %v495_v53 = vadd.f32 %v493_v52, %v484_v51 }
 0x38b   : > { %669 = vmatmul.msk.f32.vlgmr.msra.gmra.mxu2 %vm445_vm1, %v495_v53 }
 0x40e   : > { %v522_v55 = vpop.f32.mrf.mxu2 }
 0x40f   : > { %v523_v56 = vadd.f32 %v778_v54, %v522_v55 }
 0x411   : > { %v525_v57 = vadd.f32 %v523_v56, %v1206_v4 }
 0x413   : > { %526 = vst.msk [vmem:[%s359_s2] sm:$0xff] %vm369_vm0, %v525_v57 }
 0x414   : > { %964 = shalt.err (!%p961_p9)
}
 0x415   : > { %692 = dma.vmem_to_hbm [thread:$0]  (%p1157_p4), %s541_s9, 128, %s543_s15, %s528_s8  }
 0x416 PF: > { %s554_s20 = sand.u32 1, %s999_s24   ;;  %p1274_p10 = scmp.ge.s32.totalorder %s1011_s27, 2 }
 0x417   : > { %s555_s10 = scalar_lea.sflag [#allocation4], %s554_s20 }
 0x418   : > { %p712_p13 = pnand %p1274_p10, %p1161_p6 }
 0x41a   : > { %p713_p11 = pneg %p712_p13 }
 0x41c   : > { %994 = dma.done.wait (%p713_p11), %s555_s10, 128  }
 0x41d   : > { %996 = vsyncadd (%p713_p11), %s555_s10, 4294967168  ;;  %p22_p0 = scmp.ge.s32.totalorder %s1131_s17, 4   ;;  %s1275_s24 = smov %s1003_s25 }
 0x41e   : > { %s1276_s25 = smov %s1007_s26  ;;  %s1277_s26 = smov %s1142_s22 }
 0x41f   : > { %s1278_s27 = smov %s1131_s17  ;;  %24 = sbr.rel (!%p22_p0) target bundleno = 10 (0xa), region = 109 }
 0x424   :  { %561 = vsyncpa [#allocation3], 1 }
 0x425   :  { %563 = vsyncpa [#allocation3 + $0x1], 1 }
 0x426   :  { %564 = vsyncpa [#allocation6], 1 }
 0x427   :  { %565 = vsyncpa [#allocation9], 1 }
 0x428   :  { %566 = vsyncpa [#allocation4], 1 }
 0x429   :  { %568 = vsyncpa [#allocation4 + $0x1], 1 }

// kernel: _adapter_call.1
= control target key start
LH: loop header
LB: loop body
LE: loop exit
PB: predicated region body
PF: predicated region fallthrough
CT: control target
= control target key end

     0   :  { %s1255_s0 = inlined_call_operand.hbm [shape: f32[16,32], index: 0, kind: input, shape index: {}, may-alias: {0,7}]   ;;  %s1256_s1 = inlined_call_operand.hbm [shape: f32[32,144], index: 1, kind: input, shape index: {}]   ;;  %s1257_s2 = inlined_call_operand.hbm [shape: f32[1,144], index: 2, kind: input, shape index: {}]   ;;  %s1258_s3 = inlined_call_operand.hbm [shape: f32[16,48], index: 3, kind: input, shape index: {}]   ;;  %s1259_s4 = inlined_call_operand.vmem [shape: f32[1,48], index: 4, kind: input, shape index: {}]   ;;  %s1260_s5 = inlined_call_operand.hbm [shape: f32[16,32], index: 5, kind: input, shape index: {}]   ;;  %s1261_s6 = inlined_call_operand.vmem [shape: f32[1,32], index: 6, kind: input, shape index: {}]   ;;  %s1262_s7 = inlined_call_operand.hbm [shape: f32[16,32], index: 7, kind: output, shape index: {}, may-alias: {0,7}]  }
   0x1   :  { %1263 = sst [smem:[#allocation16_spill]] %s1256_s1 }
   0x2   :  { %1264 = sst [smem:[#allocation17_spill]] %s1257_s2 }
   0x3   :  { %12 = vsyncpa [#allocation3], 0 }
   0x4   :  { %14 = vsyncpa [#allocation3 + $0x1], 0 }
   0x5   :  { %15 = vsyncpa [#allocation6], 0 }
   0x6   :  { %16 = vsyncpa [#allocation9], 0 }
   0x7   :  { %17 = vsyncpa [#allocation4], 0 }
   0x8   :  { %19 = vsyncpa [#allocation4 + $0x1], 0  ;;  %s1070_s24 = smov 0   ;;  %s1072_s25 = smov 0  }
   0x9   :  { %s1074_s26 = smov 0   ;;  %s1076_s27 = smov 0  }
   0xa LB: > { %s1265_s1 = sld [smem:[#allocation16_spill]]  ;;  %s1094_s8 = sadd.s32 4294967295, %s1011_s27   ;;  %s1011_s27 = sphi %s1076_s27, %s1278_s27   ;;  %s1007_s26 = sphi %s1074_s26, %s1277_s26   ;;  %s1003_s25 = sphi %s1072_s25, %s1276_s25   ;;  %s999_s24 = sphi %s1070_s24, %s1275_s24  }
   0xb   : > { %p652_p0 = scmp.ge.s32.totalorder %s1011_s27, 1  ;;  %p46_p1 = scmp.eq.s32.totalorder %s1094_s8, 0 }
   0xc   : > { %p208_p2 = scmp.lt.s32.totalorder %s1011_s27, 3  ;;  %s1013_s10 = smov [#allocation5]  }
   0xd   : > { %s221_s11 = sshll.u32 %s1013_s10, 4  ;;  %s245_s14 = sshll.u32 %s1258_s3, 4  ;;  %s222_s11 = int_to_ptr.vmem [resolvable:$true] %s221_s11  ;;  %s246_s14 = int_to_ptr.hbm [resolvable:$true] %s245_s14 }
   0xe   : > { %p1099_p3 = pnand %p652_p0, %p208_p2  ;;  %s1014_s16 = smov [#allocation8]  }
   0xf   : > { %s247_s17 = sshll.u32 %s1014_s16, 4  ;;  %s1015_s18 = smov 256   ;;  %s248_s17 = int_to_ptr.vmem [resolvable:$true] %s247_s17 }
  0x10   : > { %s219_s30 = sshll.u32 %s1265_s1, 4  ;;  %p694_p4 = pneg %p1099_p3  ;;  %s220_s30 = int_to_ptr.hbm [resolvable:$true] %s219_s30 }
  0x11   : > { %s1016_s19 = smov 16   ;;  %s1017_s20 = smov 128  }
  0x12   : > { %p1111_p6 = pnand %p694_p4, %p46_p1  ;;  %s1018_s21 = smov 8  }
  0x13   : > { %s1268_s2 = sld [smem:[#allocation17_spill]]  ;;  %s1019_s29 = smov [#allocation7]  }
  0x14   : > { %697 = dma.hbm_to_vmem [thread:$0]  (!%p1111_p6), %s220_s30, 1024, %s222_s11, [#allocation6], %s1015_s18, %s1015_s18, %s1016_s19  }
  0x15   : > { %703 = dma.hbm_to_vmem [thread:$0]  (!%p1111_p6), %s246_s14, 256, %s248_s17, [#allocation9], %s1017_s20, %s1017_s20, %s1018_s21  }
  0x16   : > { %s236_s30 = sshll.u32 %s1019_s29, 4  ;;  %s262_s12 = sshll.u32 %s1260_s5, 4  ;;  %s237_s30 = int_to_ptr.vmem [resolvable:$true] %s236_s30  ;;  %s263_s12 = int_to_ptr.hbm [resolvable:$true] %s262_s12 }
  0x17   : > { %s1020_s13 = smov [#allocation10]   ;;  %s651_s16 = sadd.s32 4294967294, %s1011_s27  }
  0x18   : > { %s264_s14 = sshll.u32 %s1020_s13, 4  ;;  %s1131_s17 = sadd.s32 1, %s1011_s27   ;;  %s265_s14 = int_to_ptr.vmem [resolvable:$true] %s264_s14 }
  0x19   : > { %s234_s28 = sshll.u32 %s1268_s2, 4  ;;  %s29_s18 = ssub.s32 %s1011_s27, %s1131_s17  ;;  %s235_s28 = int_to_ptr.hbm [resolvable:$true] %s234_s28 }
  0x1a   : > { %700 = dma.hbm_to_vmem [thread:$0]  (!%p1111_p6), %s235_s28, 32, %s237_s30, [#allocation6]  }
  0x1b   : > { %706 = dma.hbm_to_vmem [thread:$0]  (!%p1111_p6), %s263_s12, 256, %s265_s14, [#allocation9], %s1017_s20, %s1017_s20, %s1018_s21  }
  0x1c   : > { %s32_s19 = sadd.s32 1, %s1007_s26  ;;  %p30_p7 = scmp.eq.s32.totalorder %s29_s18, 0 }
  0x1d   : > { %p39_p8 = scmp.ne.s32.totalorder %s1007_s26, %s1003_s25  ;;  %p40_p9 = scmp.eq.s32.totalorder %s1011_s27, 0 }
  0x1e   : > { %p45_p10 = scmp.ne.s32.totalorder %s1003_s25, %s999_s24  ;;  %p195_p13 = scmp.eq.s32.totalorder %s1094_s8, 1 }
  0x1f   : > { %s1142_s22 = scalar_select %p30_p7, %s1007_s26, %s32_s19  }
  0x20   : > { %p1144_p11 = por %p40_p9, %p39_p8  ;;  %p1150_p12 = por %p46_p1, %p45_p10 }
  0x21   : > { %p201_p0 = scmp.eq.s32.totalorder %s651_s16, 1  ;;  %p719_p2 = scmp.lt.s32.totalorder %s1011_s27, 2 }
  0x22   : > { %s281_s20 = sand.u32 1, %s1007_s26   ;;  %p1157_p4 = por %p195_p13, %p39_p8 }
  0x23   : > { %p1161_p6 = por %p201_p0, %p45_p10  ;;  %s658_s29 = sshll.u32 %s281_s20, 3 }
  0x24   : > { %s659_s30 = sshll.u32 %s1011_s27, 3  ;;  %s285_s13 = scalar_lea.vmem [#allocation2], %s658_s29 }
  0x25   : > { %s289_s12 = scalar_lea.hbm %s1255_s0, %s659_s30  ;;  %s293_s14 = sshll.u32 %s285_s13, 4  ;;  %s294_s14 = int_to_ptr.vmem [resolvable:$true] %s293_s14 }
  0x26   : > { %s291_s18 = sshll.u32 %s289_s12, 4  ;;  %p1171_p7 = pnand %p719_p2, %p1144_p11  ;;  %s292_s18 = int_to_ptr.hbm [resolvable:$true] %s291_s18 }
  0x27   : > { %s282_s19 = scalar_lea.sflag [#allocation3], %s281_s20  ;;  %s907_s1 = sshra.s32 %s292_s18, 4  ;;  %s908_s1 = int_to_ptr.hbm [resolvable:$true] %s907_s1 }
  0x28   : > { %s909_s2 = scalar_lea.hbm %s908_s1, 8  ;;  %p911_p9 = pneg %p1171_p7 }
  0x29   : > { %p910_p8 = scmp.ne.s32.totalorder %s908_s1, %s909_s2  ;;  %s914_s10 = scalar_lea.hbm %s1255_s0, 16 }
  0x2a   : > { %p915_p11 = scmp.lt.s32.totalorder %s908_s1, %s1255_s0  ;;  %p916_p0 = scmp.lt.s32.totalorder %s914_s10, %s909_s2 }
  0x2b   : > { %p912_p10 = pnand %p911_p9, %p910_p8 }
  0x2c   : > { %p917_p2 = por %p916_p0, %p915_p11 }
  0x2d   : > { %p913_p13 = pneg %p912_p10 }
  0x2f   : > { %p918_p5 = pnand %p917_p2, %p913_p13 }
  0x31   : > { %921 = shalt.err (!%p918_p5)
}
  0x32   : > { %710 = dma.hbm_to_vmem [thread:$0]  (!%p1171_p7), %s292_s18, 128, %s294_s14, %s282_s19  }
  0x33   : > { %302 = sbr.rel (%p1099_p3) target bundleno = 1046 (0x416), region = 48  ;;  %s1188_s20 = sand.u32 (!%p1099_p3), 1, %s1003_s25  }
  0x34   : > { %s661_s12 = sshll.u32 (!%p1099_p3), %s1188_s20, 3  ;;  %s305_s13 = scalar_lea.sflag (!%p1099_p3), [#allocation3], %s1188_s20 }
  0x35   : > { %s308_s1 = scalar_lea.vmem (!%p1099_p3), [#allocation2], %s661_s12 }
  0x38   : > { %982 = dma.done.wait (%p1150_p12), %s305_s13, 128  }
  0x39   : > { %984 = vsyncadd (%p1150_p12), %s305_s13, 4294967168 }
  0x3a   : > { %986 = dma.done.wait (%p46_p1), [#allocation6], 1056  }
  0x3b   : > { %988 = vsyncadd (%p46_p1), [#allocation6], 4294966240 }
  0x3c   : > { %990 = dma.done.wait (%p46_p1), [#allocation9], 512  }
  0x3d   : > { %992 = vsyncadd (%p46_p1), [#allocation9], 4294966784  ;;  %v364_v0 = vld [vmem:[#allocation5 + $0x30] sm:$0xff]  ;;  %v363_v1 = vld [vmem:[#allocation5 + $0x20] sm:$0xff]  ;;  %vm369_vm0 = vcmask 261120   ;;  %vm445_vm1 = vcmask 130048  }
  0x3e   : > { %385 = vmatpush.msra.mxu0 %v364_v0  ;;  %v362_v2 = vld [vmem:[#allocation5 + $0x10] sm:$0xff]  ;;  %v361_v3 = vld [vmem:[#allocation5] sm:$0xff]  ;;  %s1021_s2 = smov 127   ;;  %s1022_s9 = smov 126   ;;  %v1025_v23 = vmov 16   ;;  %v1026_v33 = vmov 18  }
  0x3f   : > { %v1206_v4 = vld [vmem:[%s308_s1] sm:$0xff]  ;;  %v439_v6 = vld [vmem:[#allocation8] sm:$0xff]  ;;  %v365_v7 = vld [vmem:[#allocation7] sm:$0x3]  ;;  %s1023_s15 = smov 1   ;;  %s1024_s14 = smov 2   ;;  %776 = vset.pattern.permute.xlu1 %v1025_v23  ;;  %775 = vset.pattern.permute.xlu0 %v1026_v33 }
  0x40   : > { %386 = vmatpush.msra.mxu0 %v363_v1  ;;  %v440_v5 = vld [vmem:[#allocation8 + $0x8] sm:$0xff]  ;;  %v367_v8 = vperm.slane %v365_v7, 0  ;;  %v1027_v34 = vmov 17   ;;  %s1028_s19 = smov 112   ;;  %s1029_s29 = smov 96   ;;  %v497_v46 = vld [vmem:[#allocation10 + $0x8] sm:$0xff] }
  0x41   : > { %462 = vmatpush.msra.mxu1 %v440_v5  ;;  %774 = vset.pattern.permute.xlu2 %v1027_v34  ;;  %v777_v39 = vld [vmem:[%s1259_s4] ss:$0 sm:$0xff]  ;;  %v496_v47 = vld [vmem:[#allocation10] sm:$0xff]  ;;  %s671_s30 = sshll.u32 %s1094_s8, 3  ;;  %s528_s8 = scalar_lea.sflag [#allocation4], %s1188_s20 }
  0x42   : > { %387 = vmatpush.msra.mxu0 %v362_v2  ;;  %519 = vmatpush.msra.mxu2 %v497_v46  ;;  %v778_v54 = vld [vmem:[%s1261_s6] ss:$0 sm:$0xff]  ;;  %s538_s1 = scalar_lea.hbm %s1262_s7, %s671_s30 }
  0x43   : > { %463 = vmatpush.msra.mxu1 %v439_v6 }
  0x44   : > { %388 = vmatpush.msra.mxu0 %v361_v3  ;;  %520 = vmatpush.msra.mxu2 %v496_v47 }
  0x45   : > { %667 = vmatmul.msk.f32.vlgmr.msra.gmra.mxu0 %vm369_vm0, %v1206_v4 }
  0xc2   : > { %v390_v9 = vpop.f32.mrf.mxu0 }
  0xc3   : > { %v391_v10 = vadd.f32 %v390_v9, %v367_v8 }
  0xc5   : > { %394 = vrot.lane.b32.xlu0 %v391_v10, %s1021_s2  ;;  %668 = vmatmul.msk.f32.vlgmr.msra.gmra.mxu1 %vm445_vm1, %v391_v10 }
  0xcd   : > { %398 = vrot.lane.b32.xlu0 %v391_v10, %s1022_s9 }
 0x137   : > { %v395_v11 = vpop.permute.xlu0 %394 }
 0x138   : > { %v397_v12 = vmax.f32 %v391_v10, %v395_v11 }
 0x13f   : > { %v399_v13 = vpop.permute.xlu0 %398 }
 0x140   : > { %v401_v14 = vmax.f32 %v397_v12, %v399_v13 }
 0x142   : > { %406 = vrot.lane.b32.xlu1 %v401_v14, %s1023_s15  ;;  %v402_v24 = vsub.f32 %v391_v10, %v401_v14  ;;  %v465_v40 = vpop.f32.mrf.mxu1 }
 0x143   : > { %v466_v41 = vadd.f32 %v777_v39, %v465_v40 }
 0x144   : > { %v403_v25 = vmul.f32 1.442695, %v402_v24 }
 0x14a   : > { %412 = vrot.lane.b32.xlu1 %v401_v14, %s1024_s14 }
 0x1b4   : > { %v407_v15 = vpop.permute.xlu1 %406 }
 0x1b5   : > { %v409_v16 = vsub.f32 %v391_v10, %v407_v15 }
 0x1b7   : > { %v410_v17 = vmul.f32 1.442695, %v409_v16 }
 0x1b9   : > { %779 = vpow2.f32 %v410_v17 }
 0x1bc   : > { %v413_v18 = vpop.permute.xlu1 %412 }
 0x1bd   : > { %v415_v19 = vsub.f32 %v391_v10, %v413_v18 }
 0x1bf   : > { %v780_v20 = vpop.eup %779  ;;  %v416_v21 = vmul.f32 1.442695, %v415_v19 }
 0x1c0   : > { %419 = vrot.lane.b32.xlu2 %v780_v20, %s1021_s2  ;;  %s359_s2 = scalar_lea.vmem [#allocation11], %s661_s12  ;;  %s957_s12 = scalar_lea.hbm %s1262_s7, 16 }
 0x1c1   : > { %781 = vpow2.f32 %v416_v21 }
 0x1c2   : > { %783 = vpow2.f32 %v403_v25 }
 0x1c7   : > { %v782_v22 = vpop.eup %781 }
 0x1c8   : > { %424 = vrot.lane.b32.xlu2 %v782_v22, %s1022_s9  ;;  %v784_v27 = vpop.eup %783  ;;  %s540_s9 = sshll.u32 %s359_s2, 4  ;;  %s541_s9 = int_to_ptr.vmem [resolvable:$true] %s540_s9 }
 0x21a   : > { %v420_v26 = vpop.permute.xlu2 %419 }
 0x21b   : > { %v422_v28 = vadd.f32 %v784_v27, %v420_v26 }
 0x222   : > { %v425_v29 = vpop.permute.xlu2 %424 }
 0x223   : > { %v427_v30 = vadd.f32 %v425_v29, %v422_v28 }
 0x225   : > { %785 = vrcp.f32 %v427_v30 }
 0x22b   : > { %v786_v31 = vpop.eup %785 }
 0x22c   : > { %435 = vrot.lane.b32.xlu1 %v786_v31, %s1024_s14  ;;  %431 = vrot.lane.b32.xlu0 %v786_v31, %s1023_s15  ;;  %v429_v32 = vmul.f32 %v786_v31, %v784_v27  ;;  %s542_s15 = sshll.u32 %s538_s1, 4  ;;  %s543_s15 = int_to_ptr.hbm [resolvable:$true] %s542_s15 }
 0x22d   : > { %s951_s14 = sshra.s32 %s543_s15, 4  ;;  %s952_s14 = int_to_ptr.hbm [resolvable:$true] %s951_s14 }
 0x22e   : > { %s953_s18 = scalar_lea.hbm %s952_s14, 8  ;;  %p958_p12 = scmp.lt.s32.totalorder %s952_s14, %s1262_s7 }
 0x22f   : > { %p954_p1 = scmp.ne.s32.totalorder %s952_s14, %s953_s18  ;;  %p959_p7 = scmp.lt.s32.totalorder %s957_s12, %s953_s18 }
 0x231   : > { %p955_p3 = pnand %p954_p1, %p1157_p4  ;;  %p960_p8 = por %p959_p7, %p958_p12 }
 0x233   : > { %p956_p5 = pneg %p955_p3 }
 0x234   : > { %470 = vperm.xlu1 %776, %v429_v32  }
 0x235   : > { %p961_p9 = pnand %p960_p8, %p956_p5 }
 0x29e   : > { %v436_v35 = vpop.permute.xlu1 %435  ;;  %v432_v36 = vpop.permute.xlu0 %431 }
 0x29f   : > { %v438_v37 = vmul.f32 %v782_v22, %v436_v35  ;;  %v434_v38 = vmul.f32 %v780_v20, %v432_v36 }
 0x2a1   : > { %487 = vperm.xlu0 %775, %v438_v37   ;;  %476 = vperm.xlu2 %774, %v434_v38  }
 0x2a6   : > { %v471_v48 = vpop.permute.xlu1 %470 }
 0x2a7   : > { %v473_v50 = vmul.f32 %v471_v48, %v466_v41 }
 0x2fb   : > { %v477_v42 = vpop.permute.xlu2 %476 }
 0x2fc   : > { %v479_v43 = vmul.f32 %v477_v42, %v466_v41 }
 0x2fe   : > { %481 = vrot.lane.b32.xlu2 %v479_v43, %s1028_s19 }
 0x313   : > { %v488_v44 = vpop.permute.xlu0 %487 }
 0x314   : > { %v490_v45 = vmul.f32 %v488_v44, %v466_v41 }
 0x316   : > { %492 = vrot.lane.b32.xlu1 %v490_v45, %s1029_s29 }
 0x358   : > { %v482_v49 = vpop.permute.xlu2 %481 }
 0x359   : > { %v484_v51 = vadd.f32 %v482_v49, %v473_v50 }
 0x388   : > { %v493_v52 = vpop.permute.xlu1 %492 }
 0x389   : > { %v495_v53 = vadd.f32 %v493_v52, %v484_v51 }
 0x38b   : > { %669 = vmatmul.msk.f32.vlgmr.msra.gmra.mxu2 %vm445_vm1, %v495_v53 }
 0x40e   : > { %v522_v55 = vpop.f32.mrf.mxu2 }
 0x40f   : > { %v523_v56 = vadd.f32 %v778_v54, %v522_v55 }
 0x411   : > { %v525_v57 = vadd.f32 %v523_v56, %v1206_v4 }
 0x413   : > { %526 = vst.msk [vmem:[%s359_s2] sm:$0xff] %vm369_vm0, %v525_v57 }
 0x414   : > { %964 = shalt.err (!%p961_p9)
}
 0x415   : > { %692 = dma.vmem_to_hbm [thread:$0]  (%p1157_p4), %s541_s9, 128, %s543_s15, %s528_s8  }
 0x416 PF: > { %s554_s20 = sand.u32 1, %s999_s24   ;;  %p1274_p10 = scmp.ge.s32.totalorder %s1011_s27, 2 }
 0x417   : > { %s555_s10 = scalar_lea.sflag [#allocation4], %s554_s20 }
 0x418   : > { %p712_p13 = pnand %p1274_p10, %p1161_p6 }
 0x41a   : > { %p713_p11 = pneg %p712_p13 }
 0x41c   : > { %994 = dma.done.wait (%p713_p11), %s555_s10, 128  }
 0x41d   : > { %996 = vsyncadd (%p713_p11), %s555_s10, 4294967168  ;;  %p22_p0 = scmp.ge.s32.totalorder %s1131_s17, 4   ;;  %s1275_s24 = smov %s1003_s25 }
 0x41e   : > { %s1276_s25 = smov %s1007_s26  ;;  %s1277_s26 = smov %s1142_s22 }
 0x41f   : > { %s1278_s27 = smov %s1131_s17  ;;  %24 = sbr.rel (!%p22_p0) target bundleno = 10 (0xa), region = 109 }
 0x424   :  { %561 = vsyncpa [#allocation3], 1 }
 0x425   :  { %563 = vsyncpa [#allocation3 + $0x1], 1 }
 0x426   :  { %564 = vsyncpa [#allocation6], 1 }
 0x427   :  { %565 = vsyncpa [#allocation9], 1 }
 0x428   :  { %566 = vsyncpa [#allocation4], 1 }
 0x429   :  { %568 = vsyncpa [#allocation4 + $0x1], 1 }

</bundles_post_ra>
